<compile_context>
chip_gen: v5e
topology: v5e:2x2
jax: 0.10.0
libtpu: 0.0.40
codegen_flags: <defaults>
</compile_context>

<pallas_src>
import functools

import jax
import jax.numpy as jnp
import numpy as np
from jax.experimental import pallas as pl
from jax.experimental.pallas import tpu as pltpu


def _mha_kernel(*refs, n_act, act_idx, n_heads, dk, mask_fill):
    act_refs = refs[:n_act]
    (qm_ref, km_ref, wq_ref, wk_ref, wv_ref,
     bq_ref, bk_ref, bv_ref, o_ref) = refs[n_act:]

    bb, m, dp = act_refs[0].shape
    d_model = n_heads * dk

    # Load each *distinct* activation tile once, flatten to (bb*M, Dp) and cast
    # to bf16 for the MXU (self-attention: a single load feeds Q, K and V).
    flat = [r[...].reshape(bb * m, dp).astype(jnp.bfloat16) for r in act_refs]
    xk = flat[act_idx[0]]
    xq = flat[act_idx[1]]
    xv = flat[act_idx[2]]

    # Fused, full-width (N = Dp) projection GEMMs: bf16 operands, f32
    # accumulation, f32 bias.  Wq / bq already carry the 1/d_model scale.
    q_all = jnp.dot(xq, wq_ref[...], preferred_element_type=jnp.float32) + bq_ref[...]
    k_all = jnp.dot(xk, wk_ref[...], preferred_element_type=jnp.float32) + bk_ref[...]
    v_all = jnp.dot(xv, wv_ref[...], preferred_element_type=jnp.float32) + bv_ref[...]

    q_all = q_all.astype(jnp.bfloat16).reshape(bb, m, dp)
    k_all = k_all.astype(jnp.bfloat16).reshape(bb, m, dp)
    v_all = v_all.astype(jnp.bfloat16).reshape(bb, m, dp)

    # Combined attention mask shared by all heads (no in-kernel transpose):
    # (bb, M, 1) * (bb, 1, M) -> (bb, M, M).
    mask = (qm_ref[...] * km_ref[...]) > 0.5

    # Per-head score / softmax / PV.  H is small -> keep the loop unrolled for
    # LLO scheduling visibility.
    # TODO(synk): for H >= 8 switch to lax.fori_loop to bound live ranges.
    outs = []
    for h in range(n_heads):
        cols = slice(h * dk, (h + 1) * dk)
        q = q_all[:, :, cols]
        k = k_all[:, :, cols]
        v = v_all[:, :, cols]

        # Scores are already divided by d_model via the folded scale.
        s = jnp.einsum('bqd,bkd->bqk', q, k, preferred_element_type=jnp.float32)
        s = jnp.where(mask, s, mask_fill)

        # Stable softmax; reciprocal goes to the EUP slot.
        s = s - jnp.max(s, axis=-1, keepdims=True)
        p = jnp.exp(s)
        l = jnp.sum(p, axis=-1, keepdims=True)

        o = jnp.einsum('bqk,bkd->bqd', p.astype(jnp.bfloat16), v,
                       preferred_element_type=jnp.float32)
        outs.append(o * pl.reciprocal(l, approx=True))

    if dp > d_model:
        outs.append(jnp.zeros((bb, m, dp - d_model), jnp.float32))

    # One lane-dense (bb, M, Dp) store per grid step.
    o_ref[...] = jnp.concatenate(outs, axis=-1).astype(o_ref.dtype)


def _round_up(x, mult):
    return ((x + mult - 1) // mult) * mult


def _vmem_estimate_bytes(block_b, n_act, mp, dp):
    """Rough per-grid-step VMEM estimate: pipelined buffers + resident weights
    + live in-kernel intermediates."""
    f32, bf16 = 4, 2
    act_tile = block_b * mp * dp * f32
    pipelined = 2 * (n_act + 1) * act_tile           # double-buffered in/out
    pipelined += 2 * 2 * block_b * mp * f32          # masks (tiny)
    weights = 3 * dp * dp * bf16 + 3 * dp * f32      # resident across grid
    live = (3 * act_tile                             # f32 projections
            + 3 * act_tile // 2                      # bf16 copies
            + 2 * block_b * mp * mp * f32            # scores + probs
            + act_tile)                              # assembled output slab
    return pipelined + weights + live


def multi_head_att(key, query, value, params, *, n_heads,
                   key_mask=None, query_mask=None,
                   masking_value=-1e15, block_b=None,
                   vmem_budget_bytes=40 * 1024 * 1024):
    """Pallas implementation of MultiHeadAtt.forward."""
    B, M, D = key.shape
    assert D % n_heads == 0
    dk = D // n_heads
    out_dtype = query.dtype

    # --- Deduplicate identical activation tensors (self-attention => 1 DMA). --
    uniq, act_idx = [], []
    for t in (key, query, value):
        for j, u in enumerate(uniq):
            if t is u:
                act_idx.append(j)
                break
        else:
            uniq.append(t)
            act_idx.append(len(uniq) - 1)
    n_act = len(uniq)

    # The torch module only applies masking when BOTH masks are given.
    if key_mask is None or query_mask is None:
        key_mask = jnp.ones((B, M), dtype=bool)
        query_mask = jnp.ones((B, M), dtype=bool)

    # --- Pad sequence to a sublane multiple and d_model to a lane multiple. ---
    mp = _round_up(M, 8)
    dp = _round_up(D, 128)
    if mp != M:
        # NOTE: rows that are fully masked in the *original* input see the
        # padded keys too (uniform softmax over mp instead of M keys); real
        # (unmasked) rows are unaffected and padded rows are sliced off below.
        pad = mp - M
        uniq = [jnp.pad(u, ((0, 0), (0, pad), (0, 0))) for u in uniq]
        key_mask = jnp.pad(key_mask, ((0, 0), (0, pad)))
        query_mask = jnp.pad(query_mask, ((0, 0), (0, pad)))
    if dp != D:
        uniq = [jnp.pad(u, ((0, 0), (0, 0), (0, dp - D))) for u in uniq]

    # Mask layouts chosen so the kernel never transposes.
    qm3 = query_mask.astype(jnp.float32).reshape(B, mp, 1)
    km3 = key_mask.astype(jnp.float32).reshape(B, 1, mp)

    # --- Weights: nn.Linear weight is [out, in]; transpose to (in, out), fold
    # --- the 1/d_model softmax scale into Wq/bq, pad to (dp, dp), pre-cast the
    # --- weights to bf16 (biases stay fp32). ---------------------------------
    inv_d = 1.0 / float(D)

    def prep_w(w, scale=1.0):
        wt = w.T.astype(jnp.float32) * scale
        wt = jnp.pad(wt, ((0, dp - D), (0, dp - D)))
        return wt.astype(jnp.bfloat16)

    def prep_b(b, scale=1.0):
        bv_ = b.astype(jnp.float32) * scale
        return jnp.pad(bv_, (0, dp - D)).reshape(1, dp)

    wq = prep_w(params["wq"], inv_d)
    wk = prep_w(params["wk"])
    wv = prep_w(params["wv"])
    bq = prep_b(params["bq"], inv_d)
    bk = prep_b(params["bk"])
    bv = prep_b(params["bv"])

    # --- Batch block: >= min(B, 4) grid steps (>= 2 per TensorCore on v7x),
    # --- largest block_b that fits the VMEM budget. --------------------------
    if block_b is None:
        target_steps = min(B, 4)
        block_b = 1
        for cand in sorted((d for d in range(1, B + 1) if B % d == 0),
                           reverse=True):
            if B // cand < target_steps:
                continue
            if _vmem_estimate_bytes(cand, n_act, mp, dp) <= vmem_budget_bytes:
                block_b = cand
                break
    assert B % block_b == 0
    nb = B // block_b

    kernel = functools.partial(
        _mha_kernel, n_act=n_act, act_idx=tuple(act_idx), n_heads=n_heads,
        dk=dk, mask_fill=float(masking_value) * inv_d)

    x_spec = pl.BlockSpec((block_b, mp, dp), lambda b: (b, 0, 0))
    qm_spec = pl.BlockSpec((block_b, mp, 1), lambda b: (b, 0, 0))
    km_spec = pl.BlockSpec((block_b, 1, mp), lambda b: (b, 0, 0))
    w_spec = pl.BlockSpec((dp, dp), lambda b: (0, 0))
    b_spec = pl.BlockSpec((1, dp), lambda b: (0, 0))

    out = pl.pallas_call(
        kernel,
        out_shape=jax.ShapeDtypeStruct((B, mp, dp), out_dtype),
        grid_spec=pltpu.PrefetchScalarGridSpec(
            num_scalar_prefetch=0,
            grid=(nb,),
            in_specs=([x_spec] * n_act
                      + [qm_spec, km_spec,
                         w_spec, w_spec, w_spec,
                         b_spec, b_spec, b_spec]),
            out_specs=x_spec,
        ),
        compiler_params=pltpu.CompilerParams(
            dimension_semantics=("parallel",),
            # Above the 16/32 MiB scoped defaults, below v7x's 64 MiB physical.
            vmem_limit_bytes=48 * 1024 * 1024),
    )(*uniq, qm3, km3, wq, wk, wv, bq, bk, bv)

    if mp != M or dp != D:
        out = out[:, :M, :D]
    return out


def multi_head_att_ref(key, query, value, params, *, n_heads,
                       key_mask=None, query_mask=None, masking_value=-1e15):
    """Pure-JAX reference mirroring the PyTorch module (fp32, HIGHEST)."""
    B, M, D = key.shape
    dk = D // n_heads
    hp = jax.lax.Precision.HIGHEST

    def lin(x, w, b):
        return jnp.dot(x, w.T, precision=hp) + b

    k = lin(key, params["wk"], params["bk"])
    q = lin(query, params["wq"], params["bq"])
    v = lin(value, params["wv"], params["bv"])

    k = k.reshape(B, M, n_heads, dk).transpose(0, 2, 3, 1)   # (B, h, dk, M)
    q = q.reshape(B, M, n_heads, dk).transpose(0, 2, 1, 3)   # (B, h, M, dk)
    v = v.reshape(B, M, n_heads, dk).transpose(0, 2, 1, 3)   # (B, h, M, dk)

    att = jnp.einsum("bhqd,bhdk->bhqk", q, k, precision=hp)  # (B, h, M, M)

    if key_mask is not None and query_mask is not None:
        mask = key_mask[:, None, :] & query_mask[:, :, None]  # (B, Mq, Mk)
        mask = mask[:, None, :, :]                            # (B, 1, Mq, Mk)
        att = jnp.where(mask, att, masking_value)

    att = jax.nn.softmax(att / D, axis=-1)
    out = jnp.einsum("bhqk,bhkd->bhqd", att, v, precision=hp)
    out = out.transpose(0, 2, 1, 3).reshape(B, M, D)
    return out


def make_params(key, d_model):
    ks = jax.random.split(key, 6)
    scale = 1.0 / np.sqrt(d_model)
    return {
        "wq": jax.random.uniform(ks[0], (d_model, d_model), jnp.float32, -scale, scale),
        "bq": jax.random.uniform(ks[1], (d_model,), jnp.float32, -scale, scale),
        "wk": jax.random.uniform(ks[2], (d_model, d_model), jnp.float32, -scale, scale),
        "bk": jax.random.uniform(ks[3], (d_model,), jnp.float32, -scale, scale),
        "wv": jax.random.uniform(ks[4], (d_model, d_model), jnp.float32, -scale, scale),
        "bv": jax.random.uniform(ks[5], (d_model,), jnp.float32, -scale, scale),
    }


if __name__ == "__main__":
    # batch=4 (grid of 4 steps, block_b=1), seq=16, d_model=32, 4 heads.
    B, M, D, H = 4, 16, 32, 4

    root = jax.random.PRNGKey(0)
    kp, kk, kq, kv, kx = jax.random.split(root, 5)

    params = make_params(kp, D)
    key_in = jax.random.normal(kk, (B, M, D), jnp.float32)
    query_in = jax.random.normal(kq, (B, M, D), jnp.float32)
    value_in = jax.random.normal(kv, (B, M, D), jnp.float32)

    # Padding masks: True = real data (includes fully-masked query rows).
    key_lens = jnp.array([M, M - 5, M - 2, M], dtype=jnp.int32)
    query_lens = jnp.array([M - 3, M, M, M - 7], dtype=jnp.int32)
    pos = jnp.arange(M)
    key_mask = pos[None, :] < key_lens[:, None]
    query_mask = pos[None, :] < query_lens[:, None]

    # 1) Cross-attention with padding masks.
    out = multi_head_att(key_in, query_in, value_in, params, n_heads=H,
                         key_mask=key_mask, query_mask=query_mask)
    out = jax.block_until_ready(out)
    ref = multi_head_att_ref(key_in, query_in, value_in, params, n_heads=H,
                             key_mask=key_mask, query_mask=query_mask)
    assert out.shape == (B, M, D)
    assert bool(jnp.all(jnp.isfinite(out)))
    # bf16 MXU operands (f32 accumulation) + approx reciprocal vs fp32 HIGHEST
    # reference: 2e-2 tolerance.
    np.testing.assert_allclose(np.asarray(out), np.asarray(ref),
                               rtol=2e-2, atol=2e-2)

    # 2) Self-attention (key is query is value) -> single deduplicated
    #    activation DMA per grid step.
    x_in = jax.random.normal(kx, (B, M, D), jnp.float32)
    out2 = multi_head_att(x_in, x_in, x_in, params, n_heads=H,
                          key_mask=key_mask, query_mask=query_mask)
    out2 = jax.block_until_ready(out2)
    ref2 = multi_head_att_ref(x_in, x_in, x_in, params, n_heads=H,
                              key_mask=key_mask, query_mask=query_mask)
    np.testing.assert_allclose(np.asarray(out2), np.asarray(ref2),
                               rtol=2e-2, atol=2e-2)

    print("KERNEL_OK")
</pallas_src>

<mosaic_0001>
module attributes {stable_mosaic.version = 11 : i64} {
  func.func @_mha_kernel(%arg0: i32, %arg1: memref<1x16x128xf32, #tpu.memory_space<vmem>>, %arg2: memref<1x16x128xf32, #tpu.memory_space<vmem>>, %arg3: memref<1x16x128xf32, #tpu.memory_space<vmem>>, %arg4: memref<1x16x1xf32, #tpu.memory_space<vmem>>, %arg5: memref<1x1x16xf32, #tpu.memory_space<vmem>>, %arg6: memref<128x128xbf16, #tpu.memory_space<vmem>>, %arg7: memref<128x128xbf16, #tpu.memory_space<vmem>>, %arg8: memref<128x128xbf16, #tpu.memory_space<vmem>>, %arg9: memref<1x128xf32, #tpu.memory_space<vmem>>, %arg10: memref<1x128xf32, #tpu.memory_space<vmem>>, %arg11: memref<1x128xf32, #tpu.memory_space<vmem>>, %arg12: memref<1x16x128xf32, #tpu.memory_space<vmem>>) attributes {dimension_semantics = [#tpu.dimension_semantics<parallel>], iteration_bounds = array<i64: 4>, scalar_prefetch = 0 : i64, scratch_operands = 0 : i64, tpu.core_type = #tpu.core_type<tc>, window_params = [{transform_indices = @transform_0, window_bounds = array<i64: 1, 16, 128>}, {transform_indices = @transform_1, window_bounds = array<i64: 1, 16, 128>}, {transform_indices = @transform_2, window_bounds = array<i64: 1, 16, 128>}, {transform_indices = @transform_3, window_bounds = array<i64: 1, 16, 1>}, {transform_indices = @transform_4, window_bounds = array<i64: 1, 1, 16>}, {pipeline_mode = #tpu.pipeline_mode<synchronous>, transform_indices = @transform_5, window_bounds = array<i64: 128, 128>}, {pipeline_mode = #tpu.pipeline_mode<synchronous>, transform_indices = @transform_6, window_bounds = array<i64: 128, 128>}, {pipeline_mode = #tpu.pipeline_mode<synchronous>, transform_indices = @transform_7, window_bounds = array<i64: 128, 128>}, {pipeline_mode = #tpu.pipeline_mode<synchronous>, transform_indices = @transform_8, window_bounds = array<i64: 1, 128>}, {pipeline_mode = #tpu.pipeline_mode<synchronous>, transform_indices = @transform_9, window_bounds = array<i64: 1, 128>}, {pipeline_mode = #tpu.pipeline_mode<synchronous>, transform_indices = @transform_10, window_bounds = array<i64: 1, 128>}, {transform_indices = @transform_11, window_bounds = array<i64: 1, 16, 128>}]} {
    %c0 = arith.constant 0 : index
    %c0_0 = arith.constant 0 : index
    %c0_1 = arith.constant 0 : index
    %0 = vector.load %arg1[%c0, %c0_0, %c0_1] : memref<1x16x128xf32, #tpu.memory_space<vmem>>, vector<1x16x128xf32>
    %1 = vector.shape_cast %0 : vector<1x16x128xf32> to vector<16x128xf32>
    %2 = arith.truncf %1 : vector<16x128xf32> to vector<16x128xbf16>
    %c0_2 = arith.constant 0 : index
    %c0_3 = arith.constant 0 : index
    %c0_4 = arith.constant 0 : index
    %3 = vector.load %arg2[%c0_2, %c0_3, %c0_4] : memref<1x16x128xf32, #tpu.memory_space<vmem>>, vector<1x16x128xf32>
    %4 = vector.shape_cast %3 : vector<1x16x128xf32> to vector<16x128xf32>
    %5 = arith.truncf %4 : vector<16x128xf32> to vector<16x128xbf16>
    %c0_5 = arith.constant 0 : index
    %c0_6 = arith.constant 0 : index
    %c0_7 = arith.constant 0 : index
    %6 = vector.load %arg3[%c0_5, %c0_6, %c0_7] : memref<1x16x128xf32, #tpu.memory_space<vmem>>, vector<1x16x128xf32>
    %7 = vector.shape_cast %6 : vector<1x16x128xf32> to vector<16x128xf32>
    %8 = arith.truncf %7 : vector<16x128xf32> to vector<16x128xbf16>
    %c0_8 = arith.constant 0 : index
    %c0_9 = arith.constant 0 : index
    %9 = vector.load %arg6[%c0_8, %c0_9] : memref<128x128xbf16, #tpu.memory_space<vmem>>, vector<128x128xbf16>
    %cst = arith.constant dense<0.000000e+00> : vector<16x128xf32>
    %10 = tpu.matmul %5, %9, %cst {dimension_numbers = #tpu.dot_dimension_numbers<[1], [0], [0], [1], [0, 0, 1, 1], [], []>} : vector<16x128xbf16>, vector<128x128xbf16>, vector<16x128xf32> -> vector<16x128xf32>
    %c0_10 = arith.constant 0 : index
    %c0_11 = arith.constant 0 : index
    %11 = vector.load %arg9[%c0_10, %c0_11] : memref<1x128xf32, #tpu.memory_space<vmem>>, vector<1x128xf32>
    %12 = vector.broadcast %11 : vector<1x128xf32> to vector<16x128xf32>
    %13 = arith.addf %10, %12 : vector<16x128xf32>
    %c0_12 = arith.constant 0 : index
    %c0_13 = arith.constant 0 : index
    %14 = vector.load %arg7[%c0_12, %c0_13] : memref<128x128xbf16, #tpu.memory_space<vmem>>, vector<128x128xbf16>
    %cst_14 = arith.constant dense<0.000000e+00> : vector<16x128xf32>
    %15 = tpu.matmul %2, %14, %cst_14 {dimension_numbers = #tpu.dot_dimension_numbers<[1], [0], [0], [1], [0, 0, 1, 1], [], []>} : vector<16x128xbf16>, vector<128x128xbf16>, vector<16x128xf32> -> vector<16x128xf32>
    %c0_15 = arith.constant 0 : index
    %c0_16 = arith.constant 0 : index
    %16 = vector.load %arg10[%c0_15, %c0_16] : memref<1x128xf32, #tpu.memory_space<vmem>>, vector<1x128xf32>
    %17 = vector.broadcast %16 : vector<1x128xf32> to vector<16x128xf32>
    %18 = arith.addf %15, %17 : vector<16x128xf32>
    %c0_17 = arith.constant 0 : index
    %c0_18 = arith.constant 0 : index
    %19 = vector.load %arg8[%c0_17, %c0_18] : memref<128x128xbf16, #tpu.memory_space<vmem>>, vector<128x128xbf16>
    %cst_19 = arith.constant dense<0.000000e+00> : vector<16x128xf32>
    %20 = tpu.matmul %8, %19, %cst_19 {dimension_numbers = #tpu.dot_dimension_numbers<[1], [0], [0], [1], [0, 0, 1, 1], [], []>} : vector<16x128xbf16>, vector<128x128xbf16>, vector<16x128xf32> -> vector<16x128xf32>
    %c0_20 = arith.constant 0 : index
    %c0_21 = arith.constant 0 : index
    %21 = vector.load %arg11[%c0_20, %c0_21] : memref<1x128xf32, #tpu.memory_space<vmem>>, vector<1x128xf32>
    %22 = vector.broadcast %21 : vector<1x128xf32> to vector<16x128xf32>
    %23 = arith.addf %20, %22 : vector<16x128xf32>
    %24 = arith.truncf %13 : vector<16x128xf32> to vector<16x128xbf16>
    %25 = vector.shape_cast %24 : vector<16x128xbf16> to vector<1x16x128xbf16>
    %26 = arith.truncf %18 : vector<16x128xf32> to vector<16x128xbf16>
    %27 = vector.shape_cast %26 : vector<16x128xbf16> to vector<1x16x128xbf16>
    %28 = arith.truncf %23 : vector<16x128xf32> to vector<16x128xbf16>
    %29 = vector.shape_cast %28 : vector<16x128xbf16> to vector<1x16x128xbf16>
    %c0_22 = arith.constant 0 : index
    %c0_23 = arith.constant 0 : index
    %c0_24 = arith.constant 0 : index
    %30 = vector.load %arg4[%c0_22, %c0_23, %c0_24] : memref<1x16x1xf32, #tpu.memory_space<vmem>>, vector<1x16x1xf32>
    %c0_25 = arith.constant 0 : index
    %c0_26 = arith.constant 0 : index
    %c0_27 = arith.constant 0 : index
    %31 = vector.load %arg5[%c0_25, %c0_26, %c0_27] : memref<1x1x16xf32, #tpu.memory_space<vmem>>, vector<1x1x16xf32>
    %32 = vector.broadcast %30 : vector<1x16x1xf32> to vector<1x16x16xf32>
    %33 = vector.broadcast %31 : vector<1x1x16xf32> to vector<1x16x16xf32>
    %34 = arith.mulf %32, %33 : vector<1x16x16xf32>
    %cst_28 = arith.constant 5.000000e-01 : f32
    %35 = vector.broadcast %cst_28 : f32 to vector<1x16x16xf32>
    %36 = arith.cmpf ogt, %34, %35 : vector<1x16x16xf32>
    %37 = vector.extract_strided_slice %25 {offsets = [0, 0, 0], sizes = [1, 16, 8], strides = [1, 1, 1]} : vector<1x16x128xbf16> to vector<1x16x8xbf16>
    %38 = vector.extract_strided_slice %27 {offsets = [0, 0, 0], sizes = [1, 16, 8], strides = [1, 1, 1]} : vector<1x16x128xbf16> to vector<1x16x8xbf16>
    %39 = vector.extract_strided_slice %29 {offsets = [0, 0, 0], sizes = [1, 16, 8], strides = [1, 1, 1]} : vector<1x16x128xbf16> to vector<1x16x8xbf16>
    "tpu.trace_start"() <{level = 10 : i32, message = "bqd,bkd->bqk"}> : () -> ()
    %cst_29 = arith.constant dense<0.000000e+00> : vector<1x16x16xf32>
    %40 = tpu.matmul %37, %38, %cst_29 {dimension_numbers = #tpu.dot_dimension_numbers<[2], [2], [1], [1], [0, 0, 0, 1, 1, 1], [0], [0]>} : vector<1x16x8xbf16>, vector<1x16x8xbf16>, vector<1x16x16xf32> -> vector<1x16x16xf32>
    %cst_30 = arith.constant -3.125000e+13 : f32
    "tpu.trace_stop"() : () -> ()
    %41 = vector.broadcast %cst_30 : f32 to vector<1x16x16xf32>
    %42 = arith.select %36, %40, %41 : vector<1x16x16xi1>, vector<1x16x16xf32>
    %cst_31 = arith.constant dense<0xFF800000> : vector<1x16xf32>
    %43 = vector.multi_reduction <maximumf>, %42, %cst_31 [2] : vector<1x16x16xf32> to vector<1x16xf32>
    %44 = vector.shape_cast %43 : vector<1x16xf32> to vector<1x16x1xf32>
    %45 = vector.broadcast %44 : vector<1x16x1xf32> to vector<1x16x16xf32>
    %46 = arith.subf %42, %45 : vector<1x16x16xf32>
    %47 = math.exp %46 : vector<1x16x16xf32>
    %cst_32 = arith.constant dense<0.000000e+00> : vector<1x16xf32>
    %48 = vector.multi_reduction <add>, %47, %cst_32 [2] : vector<1x16x16xf32> to vector<1x16xf32>
    %49 = vector.shape_cast %48 : vector<1x16xf32> to vector<1x16x1xf32>
    %50 = arith.truncf %47 : vector<1x16x16xf32> to vector<1x16x16xbf16>
    "tpu.trace_start"() <{level = 10 : i32, message = "bqk,bkd->bqd"}> : () -> ()
    %cst_33 = arith.constant dense<0.000000e+00> : vector<1x16x8xf32>
    %51 = tpu.matmul %50, %39, %cst_33 {dimension_numbers = #tpu.dot_dimension_numbers<[2], [1], [1], [2], [0, 0, 0, 1, 1, 2], [0], [0]>} : vector<1x16x16xbf16>, vector<1x16x8xbf16>, vector<1x16x8xf32> -> vector<1x16x8xf32>
    "tpu.trace_stop"() : () -> ()
    %52 = tpu.reciprocal %49 {approx = true} : vector<1x16x1xf32> -> vector<1x16x1xf32>
    %53 = vector.broadcast %52 : vector<1x16x1xf32> to vector<1x16x8xf32>
    %54 = arith.mulf %51, %53 : vector<1x16x8xf32>
    %55 = vector.extract_strided_slice %25 {offsets = [0, 0, 8], sizes = [1, 16, 8], strides = [1, 1, 1]} : vector<1x16x128xbf16> to vector<1x16x8xbf16>
    %56 = vector.extract_strided_slice %27 {offsets = [0, 0, 8], sizes = [1, 16, 8], strides = [1, 1, 1]} : vector<1x16x128xbf16> to vector<1x16x8xbf16>
    %57 = vector.extract_strided_slice %29 {offsets = [0, 0, 8], sizes = [1, 16, 8], strides = [1, 1, 1]} : vector<1x16x128xbf16> to vector<1x16x8xbf16>
    "tpu.trace_start"() <{level = 10 : i32, message = "bqd,bkd->bqk"}> : () -> ()
    %cst_34 = arith.constant dense<0.000000e+00> : vector<1x16x16xf32>
    %58 = tpu.matmul %55, %56, %cst_34 {dimension_numbers = #tpu.dot_dimension_numbers<[2], [2], [1], [1], [0, 0, 0, 1, 1, 1], [0], [0]>} : vector<1x16x8xbf16>, vector<1x16x8xbf16>, vector<1x16x16xf32> -> vector<1x16x16xf32>
    %cst_35 = arith.constant -3.125000e+13 : f32
    "tpu.trace_stop"() : () -> ()
    %59 = vector.broadcast %cst_35 : f32 to vector<1x16x16xf32>
    %60 = arith.select %36, %58, %59 : vector<1x16x16xi1>, vector<1x16x16xf32>
    %cst_36 = arith.constant dense<0xFF800000> : vector<1x16xf32>
    %61 = vector.multi_reduction <maximumf>, %60, %cst_36 [2] : vector<1x16x16xf32> to vector<1x16xf32>
    %62 = vector.shape_cast %61 : vector<1x16xf32> to vector<1x16x1xf32>
    %63 = vector.broadcast %62 : vector<1x16x1xf32> to vector<1x16x16xf32>
    %64 = arith.subf %60, %63 : vector<1x16x16xf32>
    %65 = math.exp %64 : vector<1x16x16xf32>
    %cst_37 = arith.constant dense<0.000000e+00> : vector<1x16xf32>
    %66 = vector.multi_reduction <add>, %65, %cst_37 [2] : vector<1x16x16xf32> to vector<1x16xf32>
    %67 = vector.shape_cast %66 : vector<1x16xf32> to vector<1x16x1xf32>
    %68 = arith.truncf %65 : vector<1x16x16xf32> to vector<1x16x16xbf16>
    "tpu.trace_start"() <{level = 10 : i32, message = "bqk,bkd->bqd"}> : () -> ()
    %cst_38 = arith.constant dense<0.000000e+00> : vector<1x16x8xf32>
    %69 = tpu.matmul %68, %57, %cst_38 {dimension_numbers = #tpu.dot_dimension_numbers<[2], [1], [1], [2], [0, 0, 0, 1, 1, 2], [0], [0]>} : vector<1x16x16xbf16>, vector<1x16x8xbf16>, vector<1x16x8xf32> -> vector<1x16x8xf32>
    "tpu.trace_stop"() : () -> ()
    %70 = tpu.reciprocal %67 {approx = true} : vector<1x16x1xf32> -> vector<1x16x1xf32>
    %71 = vector.broadcast %70 : vector<1x16x1xf32> to vector<1x16x8xf32>
    %72 = arith.mulf %69, %71 : vector<1x16x8xf32>
    %73 = vector.extract_strided_slice %25 {offsets = [0, 0, 16], sizes = [1, 16, 8], strides = [1, 1, 1]} : vector<1x16x128xbf16> to vector<1x16x8xbf16>
    %74 = vector.extract_strided_slice %27 {offsets = [0, 0, 16], sizes = [1, 16, 8], strides = [1, 1, 1]} : vector<1x16x128xbf16> to vector<1x16x8xbf16>
    %75 = vector.extract_strided_slice %29 {offsets = [0, 0, 16], sizes = [1, 16, 8], strides = [1, 1, 1]} : vector<1x16x128xbf16> to vector<1x16x8xbf16>
    "tpu.trace_start"() <{level = 10 : i32, message = "bqd,bkd->bqk"}> : () -> ()
    %cst_39 = arith.constant dense<0.000000e+00> : vector<1x16x16xf32>
    %76 = tpu.matmul %73, %74, %cst_39 {dimension_numbers = #tpu.dot_dimension_numbers<[2], [2], [1], [1], [0, 0, 0, 1, 1, 1], [0], [0]>} : vector<1x16x8xbf16>, vector<1x16x8xbf16>, vector<1x16x16xf32> -> vector<1x16x16xf32>
    %cst_40 = arith.constant -3.125000e+13 : f32
    "tpu.trace_stop"() : () -> ()
    %77 = vector.broadcast %cst_40 : f32 to vector<1x16x16xf32>
    %78 = arith.select %36, %76, %77 : vector<1x16x16xi1>, vector<1x16x16xf32>
    %cst_41 = arith.constant dense<0xFF800000> : vector<1x16xf32>
    %79 = vector.multi_reduction <maximumf>, %78, %cst_41 [2] : vector<1x16x16xf32> to vector<1x16xf32>
    %80 = vector.shape_cast %79 : vector<1x16xf32> to vector<1x16x1xf32>
    %81 = vector.broadcast %80 : vector<1x16x1xf32> to vector<1x16x16xf32>
    %82 = arith.subf %78, %81 : vector<1x16x16xf32>
    %83 = math.exp %82 : vector<1x16x16xf32>
    %cst_42 = arith.constant dense<0.000000e+00> : vector<1x16xf32>
    %84 = vector.multi_reduction <add>, %83, %cst_42 [2] : vector<1x16x16xf32> to vector<1x16xf32>
    %85 = vector.shape_cast %84 : vector<1x16xf32> to vector<1x16x1xf32>
    %86 = arith.truncf %83 : vector<1x16x16xf32> to vector<1x16x16xbf16>
    "tpu.trace_start"() <{level = 10 : i32, message = "bqk,bkd->bqd"}> : () -> ()
    %cst_43 = arith.constant dense<0.000000e+00> : vector<1x16x8xf32>
    %87 = tpu.matmul %86, %75, %cst_43 {dimension_numbers = #tpu.dot_dimension_numbers<[2], [1], [1], [2], [0, 0, 0, 1, 1, 2], [0], [0]>} : vector<1x16x16xbf16>, vector<1x16x8xbf16>, vector<1x16x8xf32> -> vector<1x16x8xf32>
    "tpu.trace_stop"() : () -> ()
    %88 = tpu.reciprocal %85 {approx = true} : vector<1x16x1xf32> -> vector<1x16x1xf32>
    %89 = vector.broadcast %88 : vector<1x16x1xf32> to vector<1x16x8xf32>
    %90 = arith.mulf %87, %89 : vector<1x16x8xf32>
    %91 = vector.extract_strided_slice %25 {offsets = [0, 0, 24], sizes = [1, 16, 8], strides = [1, 1, 1]} : vector<1x16x128xbf16> to vector<1x16x8xbf16>
    %92 = vector.extract_strided_slice %27 {offsets = [0, 0, 24], sizes = [1, 16, 8], strides = [1, 1, 1]} : vector<1x16x128xbf16> to vector<1x16x8xbf16>
    %93 = vector.extract_strided_slice %29 {offsets = [0, 0, 24], sizes = [1, 16, 8], strides = [1, 1, 1]} : vector<1x16x128xbf16> to vector<1x16x8xbf16>
    "tpu.trace_start"() <{level = 10 : i32, message = "bqd,bkd->bqk"}> : () -> ()
    %cst_44 = arith.constant dense<0.000000e+00> : vector<1x16x16xf32>
    %94 = tpu.matmul %91, %92, %cst_44 {dimension_numbers = #tpu.dot_dimension_numbers<[2], [2], [1], [1], [0, 0, 0, 1, 1, 1], [0], [0]>} : vector<1x16x8xbf16>, vector<1x16x8xbf16>, vector<1x16x16xf32> -> vector<1x16x16xf32>
    %cst_45 = arith.constant -3.125000e+13 : f32
    "tpu.trace_stop"() : () -> ()
    %95 = vector.broadcast %cst_45 : f32 to vector<1x16x16xf32>
    %96 = arith.select %36, %94, %95 : vector<1x16x16xi1>, vector<1x16x16xf32>
    %cst_46 = arith.constant dense<0xFF800000> : vector<1x16xf32>
    %97 = vector.multi_reduction <maximumf>, %96, %cst_46 [2] : vector<1x16x16xf32> to vector<1x16xf32>
    %98 = vector.shape_cast %97 : vector<1x16xf32> to vector<1x16x1xf32>
    %99 = vector.broadcast %98 : vector<1x16x1xf32> to vector<1x16x16xf32>
    %100 = arith.subf %96, %99 : vector<1x16x16xf32>
    %101 = math.exp %100 : vector<1x16x16xf32>
    %cst_47 = arith.constant dense<0.000000e+00> : vector<1x16xf32>
    %102 = vector.multi_reduction <add>, %101, %cst_47 [2] : vector<1x16x16xf32> to vector<1x16xf32>
    %103 = vector.shape_cast %102 : vector<1x16xf32> to vector<1x16x1xf32>
    %104 = arith.truncf %101 : vector<1x16x16xf32> to vector<1x16x16xbf16>
    "tpu.trace_start"() <{level = 10 : i32, message = "bqk,bkd->bqd"}> : () -> ()
    %cst_48 = arith.constant dense<0.000000e+00> : vector<1x16x8xf32>
    %105 = tpu.matmul %104, %93, %cst_48 {dimension_numbers = #tpu.dot_dimension_numbers<[2], [1], [1], [2], [0, 0, 0, 1, 1, 2], [0], [0]>} : vector<1x16x16xbf16>, vector<1x16x8xbf16>, vector<1x16x8xf32> -> vector<1x16x8xf32>
    "tpu.trace_stop"() : () -> ()
    %106 = tpu.reciprocal %103 {approx = true} : vector<1x16x1xf32> -> vector<1x16x1xf32>
    %107 = vector.broadcast %106 : vector<1x16x1xf32> to vector<1x16x8xf32>
    %108 = arith.mulf %105, %107 : vector<1x16x8xf32>
    %cst_49 = arith.constant 0.000000e+00 : f32
    %109 = vector.broadcast %cst_49 : f32 to vector<1x16x96xf32>
    %110 = tpu.concatenate %54, %72, %90, %108, %109 in 2 : vector<1x16x8xf32>, vector<1x16x8xf32>, vector<1x16x8xf32>, vector<1x16x8xf32>, vector<1x16x96xf32> -> vector<1x16x128xf32>
    %c0_50 = arith.constant 0 : index
    %c0_51 = arith.constant 0 : index
    %c0_52 = arith.constant 0 : index
    %111 = vector.load %arg12[%c0_50, %c0_51, %c0_52] : memref<1x16x128xf32, #tpu.memory_space<vmem>>, vector<1x16x128xf32>
    tpu.vector_store %arg12[%c0_50, %c0_51, %c0_52], %110 {strides = array<i32>} : memref<1x16x128xf32, #tpu.memory_space<vmem>>, vector<1x16x128xf32>,
    return
  }
  func.func @transform_0(%arg0: i32) -> (i32, i32, i32) {
    %c0_i32 = arith.constant 0 : i32
    %c0_i32_0 = arith.constant 0 : i32
    %c0_i32_1 = arith.constant 0 : i32
    return %arg0, %c0_i32, %c0_i32_0 : i32, i32, i32
  }
  func.func @transform_1(%arg0: i32) -> (i32, i32, i32) {
    %c0_i32 = arith.constant 0 : i32
    %c0_i32_0 = arith.constant 0 : i32
    %c0_i32_1 = arith.constant 0 : i32
    return %arg0, %c0_i32, %c0_i32_0 : i32, i32, i32
  }
  func.func @transform_2(%arg0: i32) -> (i32, i32, i32) {
    %c0_i32 = arith.constant 0 : i32
    %c0_i32_0 = arith.constant 0 : i32
    %c0_i32_1 = arith.constant 0 : i32
    return %arg0, %c0_i32, %c0_i32_0 : i32, i32, i32
  }
  func.func @transform_3(%arg0: i32) -> (i32, i32, i32) {
    %c0_i32 = arith.constant 0 : i32
    %c0_i32_0 = arith.constant 0 : i32
    %c0_i32_1 = arith.constant 0 : i32
    return %arg0, %c0_i32, %c0_i32_0 : i32, i32, i32
  }
  func.func @transform_4(%arg0: i32) -> (i32, i32, i32) {
    %c0_i32 = arith.constant 0 : i32
    %c0_i32_0 = arith.constant 0 : i32
    %c0_i32_1 = arith.constant 0 : i32
    return %arg0, %c0_i32, %c0_i32_0 : i32, i32, i32
  }
  func.func @transform_5(%arg0: i32) -> (i32, i32) {
    %c0_i32 = arith.constant 0 : i32
    %c0_i32_0 = arith.constant 0 : i32
    %c0_i32_1 = arith.constant 0 : i32
    return %c0_i32, %c0_i32_0 : i32, i32
  }
  func.func @transform_6(%arg0: i32) -> (i32, i32) {
    %c0_i32 = arith.constant 0 : i32
    %c0_i32_0 = arith.constant 0 : i32
    %c0_i32_1 = arith.constant 0 : i32
    return %c0_i32, %c0_i32_0 : i32, i32
  }
  func.func @transform_7(%arg0: i32) -> (i32, i32) {
    %c0_i32 = arith.constant 0 : i32
    %c0_i32_0 = arith.constant 0 : i32
    %c0_i32_1 = arith.constant 0 : i32
    return %c0_i32, %c0_i32_0 : i32, i32
  }
  func.func @transform_8(%arg0: i32) -> (i32, i32) {
    %c0_i32 = arith.constant 0 : i32
    %c0_i32_0 = arith.constant 0 : i32
    %c0_i32_1 = arith.constant 0 : i32
    return %c0_i32, %c0_i32_0 : i32, i32
  }
  func.func @transform_9(%arg0: i32) -> (i32, i32) {
    %c0_i32 = arith.constant 0 : i32
    %c0_i32_0 = arith.constant 0 : i32
    %c0_i32_1 = arith.constant 0 : i32
    return %c0_i32, %c0_i32_0 : i32, i32
  }
  func.func @transform_10(%arg0: i32) -> (i32, i32) {
    %c0_i32 = arith.constant 0 : i32
    %c0_i32_0 = arith.constant 0 : i32
    %c0_i32_1 = arith.constant 0 : i32
    return %c0_i32, %c0_i32_0 : i32, i32
  }
  func.func @transform_11(%arg0: i32) -> (i32, i32, i32) {
    %c0_i32 = arith.constant 0 : i32
    %c0_i32_0 = arith.constant 0 : i32
    %c0_i32_1 = arith.constant 0 : i32
    return %arg0, %c0_i32, %c0_i32_0 : i32, i32, i32
  }
}

</mosaic_0001>

<bundles_post_ra>
// kernel: tpu_custom_call.1
= control target key start
LH: loop header
LB: loop body
LE: loop exit
PB: predicated region body
PF: predicated region fallthrough
CT: control target
= control target key end

     0   :  { %s2264_s0 = inlined_call_operand.vmem [shape: f32[4,16,128], index: 0, kind: input, shape index: {}]   ;;  %s2265_s1 = inlined_call_operand.hbm [shape: f32[4,16,128], index: 1, kind: input, shape index: {}]   ;;  %s2266_s2 = inlined_call_operand.hbm [shape: f32[4,16,128], index: 2, kind: input, shape index: {}]   ;;  %s2267_s3 = inlined_call_operand.vmem [shape: f32[4,16,1], index: 3, kind: input, shape index: {}]   ;;  %s2268_s4 = inlined_call_operand.vmem [shape: f32[4,1,16], index: 4, kind: input, shape index: {}]   ;;  %s2269_s5 = inlined_call_operand.hbm [shape: bf16[128,128], index: 5, kind: input, shape index: {}]   ;;  %s2270_s6 = inlined_call_operand.hbm [shape: bf16[128,128], index: 6, kind: input, shape index: {}]   ;;  %s2271_s7 = inlined_call_operand.hbm [shape: bf16[128,128], index: 7, kind: input, shape index: {}]   ;;  %s2272_s8 = inlined_call_operand.vmem [shape: f32[1,128], index: 8, kind: input, shape index: {}]   ;;  %s2273_s9 = inlined_call_operand.vmem [shape: f32[1,128], index: 9, kind: input, shape index: {}]   ;;  %s2274_s10 = inlined_call_operand.vmem [shape: f32[1,128], index: 10, kind: input, shape index: {}]   ;;  %s2275_s11 = inlined_call_operand.hbm [shape: f32[4,16,128], index: 11, kind: output, shape index: {}]  }
   0x1   :  { %2283 = sst [smem:[#allocation23_spill]] %s2265_s1 }
   0x2   :  { %2284 = sst [smem:[#allocation24_spill]] %s2269_s5 }
   0x3   :  { %2285 = sst [smem:[#allocation25_spill]] %s2270_s6 }
   0x4   :  { %2286 = sst [smem:[#allocation26_spill]] %s2271_s7 }
   0x5   :  { %16 = vsyncpa [#allocation3], 0 }
   0x6   :  { %18 = vsyncpa [#allocation3 + $0x1], 0 }
   0x7   :  { %19 = vsyncpa [#allocation6], 0 }
   0x8   :  { %21 = vsyncpa [#allocation6 + $0x1], 0 }
   0x9   :  { %22 = vsyncpa [#allocation9], 0 }
   0xa   :  { %23 = vsyncpa [#allocation4], 0 }
   0xb   :  { %25 = vsyncpa [#allocation4 + $0x1], 0  ;;  %s1951_s17 = smov 0   ;;  %s1953_s18 = smov 0  }
   0xc   :  { %s1955_s19 = smov 0   ;;  %s1957_s20 = smov 0  }
   0xd LB: > { %2287 = sst [smem:[#allocation17_spill]] %s1862_s17  ;;  %s1972_s21 = sadd.s32 4294967295, %s1874_s20   ;;  %s1874_s20 = sphi %s1957_s20, %s2306_s20   ;;  %s1870_s19 = sphi %s1955_s19, %s2308_s19   ;;  %s1866_s18 = sphi %s1953_s18, %s2310_s18   ;;  %s1862_s17 = sphi %s1951_s17, %s2309_s17  }
   0xe   : > { %2288 = sst [smem:[#allocation18_spill]] %s1870_s19  ;;  %s1354_s22 = sadd.s32 4294967294, %s1874_s20  }
   0xf   : > { %p77_p0 = scmp.ne.s32.totalorder %s1866_s18, %s1862_s17  ;;  %p78_p1 = scmp.eq.s32.totalorder %s1972_s21, 0 }
  0x10   : > { %p305_p2 = scmp.eq.s32.totalorder %s1972_s21, 3  ;;  %p311_p3 = scmp.eq.s32.totalorder %s1354_s22, 3 }
  0x11   : > { %p1981_p4 = por %p78_p1, %p77_p0  ;;  %p1355_p5 = scmp.ge.s32.totalorder %s1874_s20, 1 }
  0x12   : > { %p1986_p6 = por %p311_p3, %p77_p0  ;;  %p318_p7 = scmp.lt.s32.totalorder %s1874_s20, 5 }
  0x13   : > { %s2292_s5 = sld [smem:[#allocation24_spill]]  ;;  %s1876_s29 = smov [#allocation7]  }
  0x14   : > { %s2290_s24 = scalar_select %p1986_p6, 1, 0 }
  0x15   : > { %p1994_p8 = pnand %p1355_p5, %p318_p7  ;;  %s331_s30 = sshll.u32 %s1876_s29, 4  ;;  %s332_s30 = int_to_ptr.vmem [resolvable:$true] %s331_s30 }
  0x16   : > { %2291 = sst [smem:[#allocation19_spill]] %s2290_s24  ;;  %s1877_s16 = smov 64  }
  0x17   : > { %p1533_p9 = pneg %p1994_p8  ;;  %s2295_s6 = sld [smem:[#allocation25_spill]] }
  0x18   : > { %s1878_s22 = smov 4   ;;  %s1879_s25 = smov [#allocation8]  }
  0x19   : > { %s329_s27 = sshll.u32 %s2292_s5, 4  ;;  %p2002_p10 = pnand %p1533_p9, %p78_p1  ;;  %s330_s27 = int_to_ptr.hbm [resolvable:$true] %s329_s27 }
  0x1a   : > { %s345_s26 = sshll.u32 %s1879_s25, 4  ;;  %s2296_s7 = sld [smem:[#allocation26_spill]]  ;;  %s346_s26 = int_to_ptr.vmem [resolvable:$true] %s345_s26 }
  0x1b   : > { %1536 = dma.hbm_to_vmem [thread:$0]  (!%p2002_p10), %s330_s27, 1024, %s332_s30, [#allocation6], %s1877_s16, %s1877_s16, %s1878_s22  }
  0x1c   : > { %s1880_s14 = smov [#allocation10]   ;;  %s2017_s27 = sadd.s32 1, %s1874_s20  }
  0x1d   : > { %s343_s15 = sshll.u32 %s2295_s6, 4  ;;  %s359_s6 = sshll.u32 %s1880_s14, 4  ;;  %s344_s15 = int_to_ptr.hbm [resolvable:$true] %s343_s15  ;;  %s360_s6 = int_to_ptr.vmem [resolvable:$true] %s359_s6 }
  0x1e   : > { %1539 = dma.hbm_to_vmem [thread:$0]  (!%p2002_p10), %s344_s15, 1024, %s346_s26, [#allocation9], %s1877_s16, %s1877_s16, %s1878_s22  }
  0x1f   : > { %2297 = sst [smem:[#allocation20_spill]] %s2017_s27  ;;  %s61_s30 = ssub.s32 %s1874_s20, %s2017_s27 }
  0x20   : > { %s357_s13 = sshll.u32 %s2296_s7, 4  ;;  %s64_s25 = sadd.s32 1, %s1870_s19  ;;  %s358_s13 = int_to_ptr.hbm [resolvable:$true] %s357_s13 }
  0x21   : > { %1542 = dma.hbm_to_vmem [thread:$0]  (!%p2002_p10), %s358_s13, 1024, %s360_s6, [#allocation9], %s1877_s16, %s1877_s16, %s1878_s22  }
  0x22   : > { %p62_p11 = scmp.eq.s32.totalorder %s61_s30, 0  ;;  %p71_p12 = scmp.ne.s32.totalorder %s1870_s19, %s1866_s18 }
  0x23   : > { %p72_p13 = scmp.eq.s32.totalorder %s1874_s20, 0  ;;  %p1557_p0 = scmp.lt.s32.totalorder %s1874_s20, 4 }
  0x24   : > { %s2029_s5 = scalar_select %p62_p11, %s1870_s19, %s64_s25  }
  0x25   : > { %p73_p3 = por %p72_p13, %p71_p12  ;;  %p2033_p5 = por %p305_p2, %p71_p12 }
  0x26   : > { %2298 = sst [smem:[#allocation21_spill]] %s2029_s5  ;;  %s390_s26 = sand.u32 1, %s1870_s19  }
  0x27   : > { %s2299_s15 = scalar_select %p2033_p5, 1, 0 }
  0x28   : > { %s1486_s29 = sshll.u32 %s1874_s20, 4  ;;  %s2039_s12 = sshll.u32 %s390_s26, 4 }
  0x29   : > { %2300 = sst [smem:[#allocation22_spill]] %s2299_s15  ;;  %s394_s14 = scalar_lea.vmem [#allocation2], %s2039_s12 }
  0x2a   : > { %s2301_s1 = sld [smem:[#allocation23_spill]]  ;;  %s402_s30 = sshll.u32 %s394_s14, 4  ;;  %s403_s30 = int_to_ptr.vmem [resolvable:$true] %s402_s30 }
  0x2b   : > { %p2047_p7 = pnand %p1557_p0, %p73_p3  ;;  %s421_s19 = scalar_lea.hbm %s2266_s2, %s1486_s29 }
  0x2c   : > { %s391_s27 = scalar_lea.sflag [#allocation3], %s390_s26 }
  0x2d   : > { %p1740_p9 = pneg %p2047_p7 }
  0x30   : > { %s399_s22 = scalar_lea.hbm %s2301_s1, %s1486_s29  ;;  %s1743_s24 = scalar_lea.hbm %s2301_s1, 64 }
  0x31   : > { %s400_s13 = sshll.u32 %s399_s22, 4  ;;  %s401_s13 = int_to_ptr.hbm [resolvable:$true] %s400_s13 }
  0x32   : > { %s1736_s6 = sshra.s32 %s401_s13, 4  ;;  %s1737_s6 = int_to_ptr.hbm [resolvable:$true] %s1736_s6 }
  0x33   : > { %s1738_s16 = scalar_lea.hbm %s1737_s6, 16  ;;  %p1744_p12 = scmp.lt.s32.totalorder %s1737_s6, %s2301_s1 }
  0x34   : > { %p1739_p2 = scmp.ne.s32.totalorder %s1737_s6, %s1738_s16  ;;  %p1745_p13 = scmp.lt.s32.totalorder %s1743_s24, %s1738_s16 }
  0x36   : > { %p1741_p10 = pnand %p1740_p9, %p1739_p2  ;;  %p1746_p0 = por %p1745_p13, %p1744_p12 }
  0x38   : > { %p1742_p11 = pneg %p1741_p10 }
  0x3a   : > { %p1747_p3 = pnand %p1746_p0, %p1742_p11 }
  0x3c   : > { %1750 = shalt.err (!%p1747_p3)
}
  0x3d   : > { %s1881_s5 = smov 128   ;;  %s1882_s26 = smov 8  }
  0x3e   : > { %1546 = dma.hbm_to_vmem [thread:$0]  (!%p2047_p7), %s401_s13, 256, %s403_s30, %s391_s27, %s1881_s5, %s1881_s5, %s1882_s26  }
  0x3f   : > { %s422_s29 = sshll.u32 %s421_s19, 4  ;;  %s416_s15 = scalar_lea.vmem [#allocation5], %s2039_s12  ;;  %s423_s29 = int_to_ptr.hbm [resolvable:$true] %s422_s29 }
  0x40   : > { %s424_s22 = sshll.u32 %s416_s15, 4  ;;  %s412_s14 = sand.u32 1, %s1874_s20   ;;  %s425_s22 = int_to_ptr.vmem [resolvable:$true] %s424_s22 }
  0x41   : > { %s413_s17 = scalar_lea.sflag [#allocation6], %s412_s14  ;;  %s1766_s6 = sshra.s32 %s423_s29, 4  ;;  %s1767_s6 = int_to_ptr.hbm [resolvable:$true] %s1766_s6 }
  0x42   : > { %s1768_s24 = scalar_lea.hbm %s1767_s6, 16  ;;  %s1773_s1 = scalar_lea.hbm %s2266_s2, 64 }
  0x43   : > { %p1769_p2 = scmp.ne.s32.totalorder %s1767_s6, %s1768_s24  ;;  %p1774_p12 = scmp.lt.s32.totalorder %s1767_s6, %s2266_s2 }
  0x44   : > { %p1775_p13 = scmp.lt.s32.totalorder %s1773_s1, %s1768_s24 }
  0x45   : > { %p1771_p10 = pnand %p1769_p2, %p1740_p9 }
  0x46   : > { %p1776_p0 = por %p1775_p13, %p1774_p12 }
  0x47   : > { %p1772_p11 = pneg %p1771_p10 }
  0x49   : > { %p1777_p3 = pnand %p1776_p0, %p1772_p11 }
  0x4b   : > { %1780 = shalt.err (!%p1777_p3)
}
  0x4c   : > { %1549 = dma.hbm_to_vmem [thread:$0]  (!%p2047_p7), %s423_s29, 256, %s425_s22, %s413_s17, %s1881_s5, %s1881_s5, %s1882_s26  }
  0x4d   : > { %450 = sbr.rel (%p1994_p8) target bundleno = 1110 (0x456), region = 64  ;;  %s2083_s15 = sand.u32 (!%p1994_p8), 1, %s1866_s18  }
  0x4e   : > { %s2086_s12 = sshll.u32 (!%p1994_p8), %s2083_s15, 4  ;;  %s453_s13 = scalar_lea.sflag (!%p1994_p8), [#allocation3], %s2083_s15 }
  0x4f   : > { %s456_s1 = scalar_lea.vmem (!%p1994_p8), [#allocation2], %s2086_s12 }
  0x52   : > { %1841 = dma.done.wait (%p1981_p4), %s453_s13, 256  }
  0x53   : > { %1843 = vsyncadd (%p1981_p4), %s453_s13, 4294967040  ;;  %s462_s28 = sand.u32 1, %s1972_s21   ;;  %s466_s25 = scalar_lea.vmem [#allocation5], %s2086_s12 }
  0x54   : > { %s463_s30 = scalar_lea.sflag [#allocation6], %s462_s28 }
  0x55   : > { %1845 = dma.done.wait (%p1981_p4), %s463_s30, 256  }
  0x56   : > { %1847 = vsyncadd (%p1981_p4), %s463_s30, 4294967040 }
  0x57   : > { %1849 = dma.done.wait (%p78_p1), [#allocation6], 1024  }
  0x58   : > { %1851 = vsyncadd (%p78_p1), [#allocation6], 4294966272 }
  0x59   : > { %1853 = dma.done.wait (%p78_p1), [#allocation9], 2048  }
  0x5a   : > { %1855 = vsyncadd (%p78_p1), [#allocation9], 4294965248  ;;  %v1497_v0 = vld [vmem:[#allocation7 + $0x38] sm:$0xff]  ;;  %v1496_v2 = vld [vmem:[#allocation7 + $0x30] sm:$0xff]  ;;  %v1883_v8 = vmov 0   ;;  %p539_p1 = scmp.lt.s32.totalorder %s1972_s21, 3 }
  0x5b   : > { %v1505_v1 = vld [vmem:[#allocation8 + $0x38] sm:$0xff]  ;;  %630 = vmatpush.bf16.msra.mxu0 %v1497_v0  ;;  %v1504_v3 = vld [vmem:[#allocation8 + $0x30] sm:$0xff]  ;;  %v1495_v4 = vld [vmem:[#allocation7 + $0x28] sm:$0xff]  ;;  %1609 = vset.pattern.permute.xlu0 %v1883_v8  ;;  %vm844_vm0 = vcmask 64512   ;;  %s1886_s26 = smov 104   ;;  %vm867_vm2 = vcmask 130048  }
  0x5c   : > { %712 = vmatpush.bf16.msra.mxu1 %v1505_v1  ;;  %v1503_v5 = vld [vmem:[#allocation8 + $0x28] sm:$0xff]  ;;  %v1513_v6 = vld [vmem:[#allocation10 + $0x38] sm:$0xff]  ;;  %v1512_v7 = vld [vmem:[#allocation10 + $0x30] sm:$0xff]  ;;  %s2110_s23 = scalar_select %p539_p1, %s1972_s21, 3  ;;  %vm1173_vm4 = vcmask 195584   ;;  %vm1176_vm5 = vcmask 261120  }
  0x5d   : > { %794 = vmatpush.bf16.msra.mxu2 %v1513_v6  ;;  %v1494_v9 = vld [vmem:[#allocation7 + $0x20] sm:$0xff]  ;;  %v1511_v11 = vld [vmem:[#allocation10 + $0x28] sm:$0xff]  ;;  %v1493_v12 = vld [vmem:[#allocation7 + $0x18] sm:$0xff]  ;;  %s1888_s14 = smov 8   ;;  %s1889_s17 = smov 24  }
  0x5e   : > { %v1502_v10 = vld [vmem:[#allocation8 + $0x20] sm:$0xff]  ;;  %v1501_v13 = vld [vmem:[#allocation8 + $0x18] sm:$0xff]  ;;  %v1492_v15 = vld [vmem:[#allocation7 + $0x10] sm:$0xff]  ;;  %s1488_s5 = sshll.u32 %s2110_s23, 4  ;;  %s551_s7 = scalar_lea.vmem %s2268_s4, %s2110_s23 }
  0x5f   : > { %631 = vmatpush.bf16.msra.mxu0 %v1496_v2  ;;  %v1510_v14 = vld [vmem:[#allocation10 + $0x20] sm:$0xff]  ;;  %v1500_v16 = vld [vmem:[#allocation8 + $0x10] sm:$0xff]  ;;  %v1509_v17 = vld [vmem:[#allocation10 + $0x18] sm:$0xff]  ;;  %s543_s22 = scalar_lea.vmem %s2264_s0, %s1488_s5  ;;  %s548_s6 = scalar_lea.vmem %s2267_s3, %s1488_s5 }
  0x60   : > { %713 = vmatpush.bf16.msra.mxu1 %v1504_v3  ;;  %v1491_v18 = vld [vmem:[#allocation7 + $0x8] sm:$0xff]  ;;  %v1508_v20 = vld [vmem:[#allocation10 + $0x10] sm:$0xff]  ;;  %v1490_v21 = vld [vmem:[#allocation7] sm:$0xff]  ;;  %s1885_s5 = smov 120   ;;  %s1887_s23 = smov 16  }
  0x61   : > { %795 = vmatpush.bf16.msra.mxu2 %v1512_v7  ;;  %v1499_v19 = vld [vmem:[#allocation8 + $0x8] sm:$0xff]  ;;  %v1498_v22 = vld [vmem:[#allocation8] sm:$0xff] }
  0x62   : > { %v556_v23 = vld [vmem:[%s456_s1] sm:$0xff]  ;;  %v557_v24 = vld [vmem:[%s456_s1 + $0x8] sm:$0xff]  ;;  %s1182_s1 = scalar_lea.sflag [#allocation4], %s2083_s15 }
  0x63   : > { %632 = vmatpush.bf16.msra.mxu0 %v1495_v4  ;;  %v553_v25 = vld [vmem:[%s543_s22] sm:$0xff]  ;;  %v554_v26 = vld [vmem:[%s543_s22 + $0x8] sm:$0xff]  ;;  %v558_v28 = vpack.c.bf16 %v557_v24, %v556_v23 }
  0x64   : > { %714 = vmatpush.bf16.msra.mxu1 %v1503_v5  ;;  %v1507_v27 = vld [vmem:[#allocation10 + $0x8] sm:$0xff]  ;;  %v555_v29 = vpack.c.bf16 %v554_v26, %v553_v25  ;;  %v1506_v30 = vld [vmem:[#allocation10] sm:$0xff] }
  0x65   : > { %796 = vmatpush.bf16.msra.mxu2 %v1511_v11  ;;  %v559_v31 = vld [vmem:[%s466_s25] sm:$0xff]  ;;  %v560_v32 = vld [vmem:[%s466_s25 + $0x8] sm:$0xff]  ;;  %s1884_s25 = smov 112  }
  0x66   : > { %v561_v33 = vpack.c.bf16 %v560_v32, %v559_v31  ;;  %v814_v34 = vld [vmem:[%s548_s6] sm:$0xff]  ;;  %v815_v35 = vld [vmem:[%s548_s6 + $0x8] sm:$0xff]  ;;  %s1514_s6 = sshll.u32 %s1972_s21, 4  ;;  %s538_s21 = scalar_lea.vmem [#allocation11], %s2086_s12 }
  0x67   : > { %633 = vmatpush.bf16.msra.mxu0 %v1494_v9  ;;  %819 = vperm.xlu0 %1609, %v814_v34   ;;  %v1611_v38 = vld [vmem:[%s2273_s9] ss:$0 sm:$0xff]  ;;  %s1194_s27 = sshll.u32 %s538_s21, 4  ;;  %s1195_s27 = int_to_ptr.vmem [resolvable:$true] %s1194_s27 }
  0x68   : > { %715 = vmatpush.bf16.msra.mxu1 %v1502_v10  ;;  %v1610_v40 = vld [vmem:[%s2272_s8] ss:$0 sm:$0xff] }
  0x69   : > { %797 = vmatpush.bf16.msra.mxu2 %v1510_v14  ;;  %v1612_v48 = vld [vmem:[%s2274_s10] ss:$0 sm:$0xff] }
  0x6a   : > { %v1613_v11 = vld [vmem:[%s551_s7] ss:$0 sm:$0xff]  ;;  %s1193_s7 = scalar_lea.hbm %s2275_s11, %s1514_s6 }
  0x6b   : > { %634 = vmatpush.bf16.msra.mxu0 %v1493_v12  ;;  %s1196_s13 = sshll.u32 %s1193_s7, 4  ;;  %s1197_s13 = int_to_ptr.hbm [resolvable:$true] %s1196_s13 }
  0x6c   : > { %716 = vmatpush.bf16.msra.mxu1 %v1501_v13  ;;  %s1810_s28 = sshra.s32 %s1197_s13, 4  ;;  %s1811_s28 = int_to_ptr.hbm [resolvable:$true] %s1810_s28 }
  0x6d   : > { %798 = vmatpush.bf16.msra.mxu2 %v1509_v17  ;;  %s1812_s12 = scalar_lea.hbm %s1811_s28, 16  ;;  %p1817_p9 = scmp.lt.s32.totalorder %s1811_s28, %s2275_s11 }
  0x6e   : > { %p1813_p4 = scmp.ne.s32.totalorder %s1811_s28, %s1812_s12 }
  0x6f   : > { %635 = vmatpush.bf16.msra.mxu0 %v1492_v15  ;;  %824 = vperm.xlu0 %1609, %v815_v35  }
  0x70   : > { %717 = vmatpush.bf16.msra.mxu1 %v1500_v16  ;;  %p1814_p8 = pnand %p1813_p4, %p2033_p5 }
  0x71   : > { %799 = vmatpush.bf16.msra.mxu2 %v1508_v20 }
  0x72   : > { %p1815_p7 = pneg %p1814_p8 }
  0x73   : > { %636 = vmatpush.bf16.msra.mxu0 %v1491_v18 }
  0x74   : > { %718 = vmatpush.bf16.msra.mxu1 %v1499_v19 }
  0x75   : > { %800 = vmatpush.bf16.msra.mxu2 %v1507_v27 }
  0x77   : > { %637 = vmatpush.bf16.msra.mxu0 %v1490_v21 }
  0x78   : > { %719 = vmatpush.bf16.msra.mxu1 %v1498_v22 }
  0x79   : > { %801 = vmatpush.bf16.msra.mxu2 %v1506_v30 }
  0x7a   : > { %638 = vmatmul.bf16.vlgmr.msra.gmra.mxu0 %v558_v28 }
  0x7b   : > { %720 = vmatmul.bf16.vlgmr.msra.gmra.mxu1 %v555_v29 }
  0x7c   : > { %802 = vmatmul.bf16.vlgmr.msra.gmra.mxu2 %v561_v33 }
  0xd9   : > { %v820_v5 = vpop.permute.xlu0 %819 }
  0xda   : > { %v2162_v12 = vmul.f32 %v1613_v11, %v820_v5 }
  0xdc   : > { %vm832_vm1 = vcmp.gt.f32.partialorder %v2162_v12, 0.5 }
  0xe1   : > { %v825_v6 = vpop.permute.xlu0 %824 }
  0xe2   : > { %v2168_v16 = vmul.f32 %v1613_v11, %v825_v6 }
  0xe4   : > { %vm833_vm3 = vcmp.gt.f32.partialorder %v2168_v16, 0.5 }
  0xf7   : > { %v639_v36 = vpop.f32.mrf.mxu0 }
  0xf8   : > { %v721_v37 = vpop.f32.mrf.mxu1  ;;  %v640_v45 = vadd.f32 %v1610_v40, %v639_v36 }
  0xf9   : > { %v722_v39 = vadd.f32 %v1611_v38, %v721_v37 }
  0xfa   : > { %v808_v52 = vpack.c.bf16 %v640_v45, %v640_v45 }
  0xfb   : > { %v810_v43 = vpack.c.bf16 %v722_v39, %v722_v39 }
  0xfc   : > { %v836_v57 = vunpack.c.l.b16 %v808_v52 }
  0xfd   : > { %v841_v50 = vunpack.c.l.b16 %v810_v43 }
  0xff   : > { %v641_v41 = vpop.f32.mrf.mxu0  ;;  %v803_v49 = vpop.f32.mrf.mxu2 }
 0x100   : > { %v723_v42 = vpop.f32.mrf.mxu1  ;;  %v642_v46 = vadd.f32 %v1610_v40, %v641_v41  ;;  %v804_v55 = vadd.f32 %v1612_v48, %v803_v49 }
 0x101   : > { %v724_v44 = vadd.f32 %v1611_v38, %v723_v42 }
 0x102   : > { %v809_v53 = vpack.c.bf16 %v642_v46, %v642_v46  ;;  %v812_v59 = vpack.c.bf16 %v804_v55, %v804_v55 }
 0x103   : > { %v811_v47 = vpack.c.bf16 %v724_v44, %v724_v44 }
 0x104   : > { %v837_v58 = vunpack.c.l.b16 %v809_v53  ;;  %v895_v63 = vunpack.c.l.b16 %v812_v59 }
 0x105   : > { %v842_v51 = vunpack.c.l.b16 %v811_v47 }
 0x106   : > { %v838_v62 = vpack.c.b16 %v837_v58, %v836_v57 }
 0x107   : > { %v843_v54 = vpack.c.b16 %v842_v51, %v841_v50  ;;  %v805_v60 = vpop.f32.mrf.mxu2 }
 0x108   : > { %v806_v61 = vadd.f32 %v1612_v48, %v805_v60 }
 0x109   : > { %997 = vrot.lane.b32.xlu0 %v843_v54, %s1884_s25  ;;  %922 = vrot.lane.b32.xlu2 %v843_v54, %s1885_s5  ;;  %v849_v56 = vsel %vm844_vm0, %v843_v54, 0 }
 0x10a   : > { %858 = vmatpush.bf16.xpose.msra.mxu3 %v849_v56  ;;  %v813_v0 = vpack.c.bf16 %v806_v61, %v806_v61 }
 0x10c   : > { %v896_v1 = vunpack.c.l.b16 %v813_v0 }
 0x10e   : > { %v2150_v2 = vpack.c.b16 %v896_v1, %v895_v63 }
 0x111   : > { %1070 = vrot.lane.b32.xlu0 %v838_v62, %s1886_s26  ;;  %920 = vrot.lane.b32.xlu2 %v838_v62, %s1885_s5 }
 0x112   : > { %1473 = vmatmul.msk.bf16.vlgmr.msra.gmra.mxu3 %vm844_vm0, %v838_v62 }
 0x113   : > { %909 = vmatpush.bf16.msrb.mxu3 %v2150_v2 }
 0x119   : > { %995 = vrot.lane.b32.xlu2 %v838_v62, %s1884_s25 }
 0x163   : > { %v923_v3 = vpop.permute.xlu2 %922 }
 0x164   : > { %v928_v4 = vsel %vm844_vm0, %v923_v3, 0 }
 0x165   : > { %937 = vmatpush.bf16.xpose.msra.mxu3 %v928_v4 }
 0x16b   : > { %v921_v7 = vpop.permute.xlu2 %920 }
 0x173   : > { %v996_v10 = vpop.permute.xlu2 %995 }
 0x17b   : > { %v998_v8 = vpop.permute.xlu0 %997 }
 0x17c   : > { %v1003_v9 = vsel %vm844_vm0, %v998_v8, 0 }
 0x17d   : > { %1012 = vmatpush.bf16.xpose.msrb.mxu1 %v1003_v9 }
 0x183   : > { %v1071_v41 = vpop.permute.xlu0 %1070 }
 0x184   : > { %1477 = vmatmul.msk.bf16.vlgmr.msrb.gmra.mxu1 %vm844_vm0, %v996_v10 }
 0x195   : > { %v860_v13 = vpop.f32.mrf.mxu3 }
 0x196   : > { %v865_v14 = vsel %vm832_vm1, %v860_v13, -3.125e+13 }
 0x197   : > { %v868_v15 = vsel %vm867_vm2, %v865_v14, -inf }
 0x198   : > { %869 = vmax.xlane.f32.xlu1 %v868_v15 }
 0x19d   : > { %v862_v17 = vpop.f32.mrf.mxu3 }
 0x19e   : > { %v866_v18 = vsel %vm833_vm3, %v862_v17, -3.125e+13 }
 0x19f   : > { %v871_v19 = vsel %vm867_vm2, %v866_v18, -inf }
 0x1a0   : > { %872 = vmax.xlane.f32.xlu1 %v871_v19 }
 0x1b9   : > { %1072 = vrot.lane.b32.xlu1 %v843_v54, %s1886_s26 }
 0x201   : > { %v1014_v20 = vpop.f32.mrf.mxu1 }
 0x202   : > { %v1019_v21 = vsel %vm832_vm1, %v1014_v20, -3.125e+13 }
 0x203   : > { %v1021_v22 = vsel %vm867_vm2, %v1019_v21, -inf }
 0x204   : > { %1022 = vmax.xlane.f32.xlu1 %v1021_v22 }
 0x209   : > { %v1016_v23 = vpop.f32.mrf.mxu1 }
 0x20a   : > { %v1020_v24 = vsel %vm833_vm3, %v1016_v23, -3.125e+13 }
 0x20b   : > { %v870_v25 = vpop.xlane.xlu1 %869  ;;  %v1024_v26 = vsel %vm867_vm2, %v1020_v24, -inf }
 0x20c   : > { %v874_v27 = vsub.f32 %v865_v14, %v870_v25  ;;  %1025 = vmax.xlane.f32.xlu2 %v1024_v26 }
 0x20e   : > { %v876_v28 = vmul.f32 1.442695, %v874_v27 }
 0x210   : > { %1614 = vpow2.f32 %v876_v28 }
 0x213   : > { %v873_v29 = vpop.xlane.xlu1 %872 }
 0x214   : > { %v875_v30 = vsub.f32 %v866_v18, %v873_v29 }
 0x216   : > { %v878_v31 = vmul.f32 1.442695, %v875_v30  ;;  %v1615_v32 = vpop.eup %1614 }
 0x217   : > { %v886_v33 = vpack.c.bf16 %v1615_v32, %v1615_v32  ;;  %v880_v10 = vsel %vm867_vm2, %v1615_v32, 0.0 }
 0x218   : > { %1616 = vpow2.f32 %v878_v31 }
 0x219   : > { %v890_v36 = vunpack.c.l.b16 %v886_v33 }
 0x21d   : > { %1046 = vrot.lane.b32.xlu1 %v2150_v2, %s1884_s25 }
 0x21e   : > { %v1617_v34 = vpop.eup %1616 }
 0x21f   : > { %v887_v35 = vpack.c.bf16 %v1617_v34, %v1617_v34  ;;  %v883_v8 = vsel %vm867_vm2, %v1617_v34, 0.0 }
 0x221   : > { %v891_v37 = vunpack.c.l.b16 %v887_v35 }
 0x223   : > { %v892_v38 = vpack.c.b16 %v891_v37, %v890_v36 }
 0x225   : > { %1474 = vmatmul.msk.bf16.vlgmr.msrb.gmra.mxu3 %vm867_vm2, %v892_v38 }
 0x22b   : > { %v1073_v39 = vpop.permute.xlu1 %1072 }
 0x22c   : > { %v1078_v40 = vsel %vm844_vm0, %v1073_v39, 0 }
 0x22d   : > { %1087 = vmatpush.bf16.xpose.msrb.mxu3 %v1078_v40 }
 0x235   : > { %1475 = vmatmul.msk.bf16.vlgmr.msra.gmra.mxu3 %vm844_vm0, %v921_v7 }
 0x245   : > { %1479 = vmatmul.msk.bf16.vlgmr.msrb.gmra.mxu3 %vm844_vm0, %v1071_v41 }
 0x277   : > { %v1023_v42 = vpop.xlane.xlu1 %1022 }
 0x278   : > { %v1027_v43 = vsub.f32 %v1019_v21, %v1023_v42 }
 0x27a   : > { %v1029_v44 = vmul.f32 1.442695, %v1027_v43 }
 0x27c   : > { %1618 = vpow2.f32 %v1029_v44 }
 0x27f   : > { %v1026_v45 = vpop.xlane.xlu2 %1025 }
 0x280   : > { %v1028_v46 = vsub.f32 %v1020_v24, %v1026_v45 }
 0x282   : > { %v1031_v47 = vmul.f32 1.442695, %v1028_v46  ;;  %v1619_v48 = vpop.eup %1618 }
 0x283   : > { %v1039_v50 = vpack.c.bf16 %v1619_v48, %v1619_v48  ;;  %v1033_v9 = vsel %vm867_vm2, %v1619_v48, 0.0 }
 0x284   : > { %1620 = vpow2.f32 %v1031_v47 }
 0x285   : > { %v1043_v53 = vunpack.c.l.b16 %v1039_v50 }
 0x28a   : > { %v1621_v49 = vpop.eup %1620 }
 0x28b   : > { %v1040_v51 = vpack.c.bf16 %v1621_v49, %v1621_v49  ;;  %v1036_v7 = vsel %vm867_vm2, %v1621_v49, 0.0 }
 0x28d   : > { %v1044_v52 = vunpack.c.l.b16 %v1040_v51 }
 0x28f   : > { %v1047_v54 = vpop.permute.xlu1 %1046  ;;  %v1045_v55 = vpack.c.b16 %v1044_v52, %v1043_v53 }
 0x290   : > { %1059 = vmatpush.bf16.msrb.mxu2 %v1047_v54 }
 0x293   : > { %1478 = vmatmul.msk.bf16.vlgmr.msrb.gmra.mxu2 %vm867_vm2, %v1045_v55 }
 0x2a8   : > { %v2188_v56 = vpop.f32.mrf.mxu3 }
 0x2b0   : > { %v2190_v57 = vpop.f32.mrf.mxu3 }
 0x2b8   : > { %v939_v58 = vpop.f32.mrf.mxu3 }
 0x2b9   : > { %v944_v59 = vsel %vm832_vm1, %v939_v58, -3.125e+13 }
 0x2ba   : > { %v946_v60 = vsel %vm867_vm2, %v944_v59, -inf }
 0x2bb   : > { %947 = vmax.xlane.f32.xlu2 %v946_v60 }
 0x2c0   : > { %v941_v61 = vpop.f32.mrf.mxu3 }
 0x2c1   : > { %v945_v62 = vsel %vm833_vm3, %v941_v61, -3.125e+13 }
 0x2c2   : > { %v949_v63 = vsel %vm867_vm2, %v945_v62, -inf }
 0x2c3   : > { %950 = vmax.xlane.f32.xlu0 %v949_v63 }
 0x2c8   : > { %v1089_v0 = vpop.f32.mrf.mxu3 }
 0x2c9   : > { %v1094_v1 = vsel %vm832_vm1, %v1089_v0, -3.125e+13 }
 0x2ca   : > { %v1096_v3 = vsel %vm867_vm2, %v1094_v1, -inf }
 0x2cb   : > { %1097 = vmax.xlane.f32.xlu0 %v1096_v3 }
 0x2d0   : > { %v1091_v4 = vpop.f32.mrf.mxu3 }
 0x2d1   : > { %v1095_v5 = vsel %vm833_vm3, %v1091_v4, -3.125e+13 }
 0x2d2   : > { %v1099_v6 = vsel %vm867_vm2, %v1095_v5, -inf }
 0x2d3   : > { %971 = vrot.lane.b32.xlu2 %v2150_v2, %s1885_s5  ;;  %1100 = vmax.xlane.f32.xlu0 %v1099_v6  ;;  %s1816_s5 = scalar_lea.hbm %s2275_s11, 64 }
 0x2d4   : > { %p1818_p2 = scmp.lt.s32.totalorder %s1816_s5, %s1812_s12 }
 0x2d6   : > { %p1819_p10 = por %p1818_p2, %p1817_p9 }
 0x2d8   : > { %p1820_p11 = pnand %p1819_p10, %p1815_p7 }
 0x2e7   : > { %1121 = vrot.lane.b32.xlu0 %v2150_v2, %s1886_s26 }
 0x2fc   : > { %1037 = vadd.xlane.f32.xlu2 %v1036_v7 }
 0x304   : > { %884 = vadd.xlane.f32.xlu2 %v883_v8 }
 0x311   : > { %1034 = vadd.xlane.f32.xlu0 %v1033_v9 }
 0x316   : > { %v1061_v44 = vpop.f32.mrf.mxu2 }
 0x319   : > { %881 = vadd.xlane.f32.xlu0 %v880_v10 }
 0x31e   : > { %v1063_v60 = vpop.f32.mrf.mxu2 }
 0x32e   : > { %v948_v11 = vpop.xlane.xlu2 %947 }
 0x32f   : > { %v952_v12 = vsub.f32 %v944_v59, %v948_v11 }
 0x331   : > { %v954_v13 = vmul.f32 1.442695, %v952_v12 }
 0x333   : > { %1622 = vpow2.f32 %v954_v13 }
 0x336   : > { %v972_v14 = vpop.permute.xlu2 %971  ;;  %v951_v15 = vpop.xlane.xlu0 %950 }
 0x337   : > { %v953_v16 = vsub.f32 %v945_v62, %v951_v15  ;;  %984 = vmatpush.bf16.msrb.mxu0 %v972_v14 }
 0x339   : > { %v1623_v2 = vpop.eup %1622  ;;  %v956_v17 = vmul.f32 1.442695, %v953_v16 }
 0x33a   : > { %v958_v18 = vsel %vm867_vm2, %v1623_v2, 0.0  ;;  %v964_v21 = vpack.c.bf16 %v1623_v2, %v1623_v2 }
 0x33b   : > { %1624 = vpow2.f32 %v956_v17  ;;  %959 = vadd.xlane.f32.xlu2 %v958_v18 }
 0x33c   : > { %v968_v26 = vunpack.c.l.b16 %v964_v21 }
 0x33e   : > { %v1098_v19 = vpop.xlane.xlu0 %1097 }
 0x33f   : > { %v1102_v20 = vsub.f32 %v1094_v1, %v1098_v19 }
 0x341   : > { %v1625_v22 = vpop.eup %1624  ;;  %v1104_v23 = vmul.f32 1.442695, %v1102_v20 }
 0x342   : > { %v965_v24 = vpack.c.bf16 %v1625_v22, %v1625_v22  ;;  %v961_v25 = vsel %vm867_vm2, %v1625_v22, 0.0 }
 0x343   : > { %1626 = vpow2.f32 %v1104_v23  ;;  %962 = vadd.xlane.f32.xlu1 %v961_v25 }
 0x344   : > { %v969_v27 = vunpack.c.l.b16 %v965_v24 }
 0x346   : > { %v1101_v28 = vpop.xlane.xlu0 %1100  ;;  %v970_v29 = vpack.c.b16 %v969_v27, %v968_v26 }
 0x347   : > { %v1103_v30 = vsub.f32 %v1095_v5, %v1101_v28 }
 0x348   : > { %1476 = vmatmul.msk.bf16.vlgmr.msrb.gmra.mxu0 %vm867_vm2, %v970_v29 }
 0x349   : > { %v1627_v31 = vpop.eup %1626  ;;  %v1106_v32 = vmul.f32 1.442695, %v1103_v30 }
 0x34a   : > { %v1108_v33 = vsel %vm867_vm2, %v1627_v31, 0.0  ;;  %v1114_v37 = vpack.c.bf16 %v1627_v31, %v1627_v31 }
 0x34b   : > { %1628 = vpow2.f32 %v1106_v32  ;;  %1109 = vadd.xlane.f32.xlu2 %v1108_v33 }
 0x34c   : > { %v1118_v39 = vunpack.c.l.b16 %v1114_v37 }
 0x351   : > { %v1629_v34 = vpop.eup %1628 }
 0x352   : > { %v1111_v35 = vsel %vm867_vm2, %v1629_v34, 0.0  ;;  %v1115_v36 = vpack.c.bf16 %v1629_v34, %v1629_v34 }
 0x353   : > { %1112 = vadd.xlane.f32.xlu1 %v1111_v35 }
 0x354   : > { %v1119_v38 = vunpack.c.l.b16 %v1115_v36 }
 0x356   : > { %v1120_v41 = vpack.c.b16 %v1119_v38, %v1118_v39 }
 0x359   : > { %v1122_v40 = vpop.permute.xlu0 %1121 }
 0x35a   : > { %1134 = vmatpush.bf16.msra.mxu0 %v1122_v40 }
 0x35d   : > { %1480 = vmatmul.msk.bf16.vlgmr.msra.gmra.mxu0 %vm867_vm2, %v1120_v41 }
 0x36f   : > { %v1038_v46 = vpop.xlane.xlu2 %1037 }
 0x377   : > { %v885_v47 = vpop.xlane.xlu2 %884 }
 0x384   : > { %v1035_v42 = vpop.xlane.xlu0 %1034 }
 0x385   : > { %1630 = vrcp.f32 %v1035_v42 }
 0x38b   : > { %v1631_v43 = vpop.eup %1630 }
 0x38c   : > { %v1068_v45 = vmul.f32 %v1631_v43, %v1061_v44  ;;  %v882_v6 = vpop.xlane.xlu0 %881 }
 0x38e   : > { %1155 = vrot.lane.b32.xlu2 %v1068_v45, %s1887_s23 }
 0x3ae   : > { %v960_v48 = vpop.xlane.xlu2 %959 }
 0x3af   : > { %1632 = vrcp.f32 %v960_v48 }
 0x3b5   : > { %v1633_v50 = vpop.eup %1632 }
 0x3b6   : > { %v963_v49 = vpop.xlane.xlu1 %962 }
 0x3b7   : > { %1634 = vrcp.f32 %v963_v49 }
 0x3b8   : > { %1636 = vrcp.f32 %v1038_v46 }
 0x3bd   : > { %v1635_v53 = vpop.eup %1634 }
 0x3be   : > { %v1110_v58 = vpop.xlane.xlu2 %1109  ;;  %v1637_v59 = vpop.eup %1636 }
 0x3bf   : > { %1638 = vrcp.f32 %v1110_v58  ;;  %v1069_v61 = vmul.f32 %v1637_v59, %v1063_v60 }
 0x3c5   : > { %v986_v51 = vpop.f32.mrf.mxu0  ;;  %v1639_v63 = vpop.eup %1638 }
 0x3c6   : > { %v993_v52 = vmul.f32 %v1633_v50, %v986_v51  ;;  %v1113_v62 = vpop.xlane.xlu1 %1112 }
 0x3c7   : > { %1640 = vrcp.f32 %v1113_v62 }
 0x3c8   : > { %1147 = vrot.lane.b32.xlu1 %v993_v52, %s1888_s14  ;;  %1642 = vrcp.f32 %v885_v47 }
 0x3c9   : > { %1644 = vrcp.f32 %v882_v6 }
 0x3cd   : > { %v988_v54 = vpop.f32.mrf.mxu0  ;;  %v1641_v3 = vpop.eup %1640 }
 0x3ce   : > { %v994_v55 = vmul.f32 %v1635_v53, %v988_v54  ;;  %v1643_v9 = vpop.eup %1642 }
 0x3cf   : > { %v1645_v10 = vpop.eup %1644  ;;  %v919_v12 = vmul.f32 %v1643_v9, %v2190_v57 }
 0x3d0   : > { %1149 = vrot.lane.b32.xlu0 %v994_v55, %s1888_s14  ;;  %v918_v13 = vmul.f32 %v1645_v10, %v2188_v56 }
 0x3d8   : > { %1157 = vrot.lane.b32.xlu0 %v1069_v61, %s1887_s23 }
 0x3da   : > { %v1136_v0 = vpop.f32.mrf.mxu0 }
 0x3db   : > { %v1143_v1 = vmul.f32 %v1639_v63, %v1136_v0 }
 0x3dd   : > { %1163 = vrot.lane.b32.xlu1 %v1143_v1, %s1889_s17 }
 0x3e2   : > { %v1138_v4 = vpop.f32.mrf.mxu0 }
 0x3e3   : > { %v1144_v5 = vmul.f32 %v1641_v3, %v1138_v4 }
 0x3e5   : > { %1165 = vrot.lane.b32.xlu2 %v1144_v5, %s1889_s17 }
 0x3e8   : > { %v1156_v8 = vpop.permute.xlu2 %1155 }
 0x43a   : > { %v1148_v11 = vpop.permute.xlu1 %1147 }
 0x43b   : > { %v1169_v17 = vsel %vm844_vm0, %v918_v13, %v1148_v11 }
 0x43c   : > { %v1171_v57 = vsel %vm867_vm2, %v1169_v17, %v1156_v8 }
 0x43f   : > { %v1166_v16 = vpop.permute.xlu2 %1165 }
 0x442   : > { %v1150_v7 = vpop.permute.xlu0 %1149 }
 0x443   : > { %v1170_v14 = vsel %vm844_vm0, %v919_v12, %v1150_v7 }
 0x44a   : > { %v1158_v15 = vpop.permute.xlu0 %1157 }
 0x44b   : > { %v1172_v2 = vsel %vm867_vm2, %v1170_v14, %v1158_v15 }
 0x44c   : > { %v1175_v18 = vsel %vm1173_vm4, %v1172_v2, %v1166_v16 }
 0x44d   : > { %v1178_v56 = vsel %vm1176_vm5, %v1175_v18, 0.0 }
 0x44e   : > { %1180 = vst [vmem:[%s538_s21 + $0x8] sm:$0xff] %v1178_v56 }
 0x44f   : > { %v1164_v19 = vpop.permute.xlu1 %1163 }
 0x450   : > { %v1174_v20 = vsel %vm1173_vm4, %v1171_v57, %v1164_v19 }
 0x451   : > { %v1177_v21 = vsel %vm1176_vm5, %v1174_v20, 0.0 }
 0x452   : > { %1179 = vst [vmem:[%s538_s21] sm:$0xff] %v1177_v21 }
 0x453   : > { %1823 = shalt.err (!%p1820_p11)
}
 0x454   : > { %s1890_s15 = smov 128  }
 0x455   : > { %1531 = dma.vmem_to_hbm [thread:$0]  (%p2033_p5), %s1195_s27, 256, %s1197_s13, %s1182_s1, %s1890_s15, %s1890_s15, %s1888_s14  }
 0x456 PF: > { %s2304_s22 = sld [smem:[#allocation17_spill]]  ;;  %p1561_p12 = scmp.ge.s32.totalorder %s1874_s20, 2 }
 0x458   : > { %p1551_p13 = pnand %p1561_p12, %p1986_p6 }
 0x45a   : > { %p1552_p0 = pneg %p1551_p13 }
 0x45c   : > { %s1211_s17 = sand.u32 1, %s2304_s22  }
 0x45d   : > { %s1212_s6 = scalar_lea.sflag [#allocation4], %s1211_s17 }
 0x45e   : > { %1857 = dma.done.wait (%p1552_p0), %s1212_s6, 256  }
 0x45f   : > { %1859 = vsyncadd (%p1552_p0), %s1212_s6, 4294967040  ;;  %s2306_s20 = sld [smem:[#allocation20_spill]]  ;;  %s2309_s17 = smov %s1866_s18 }
 0x460   : > { %s2307_s24 = sld [smem:[#allocation18_spill]] }
 0x461   : > { %s2308_s19 = sld [smem:[#allocation21_spill]] }
 0x465   : > { %p28_p3 = scmp.ge.s32.totalorder %s2306_s20, 6  }
 0x466   : > { %s2310_s18 = smov %s2307_s24 }
 0x467   :  { %30 = sbr.rel (!%p28_p3) target bundleno = 13 (0xd), region = 143 }
 0x46c   :  { %1218 = vsyncpa [#allocation3], 1 }
 0x46d   :  { %1220 = vsyncpa [#allocation3 + $0x1], 1 }
 0x46e   :  { %1221 = vsyncpa [#allocation6], 1 }
 0x46f   :  { %1223 = vsyncpa [#allocation6 + $0x1], 1 }
 0x470   :  { %1224 = vsyncpa [#allocation9], 1 }
 0x471   :  { %1225 = vsyncpa [#allocation4], 1 }
 0x472   :  { %1227 = vsyncpa [#allocation4 + $0x1], 1 }

</bundles_post_ra>
